<compile_context>
chip_gen: v6e
topology: v6e:2x2x1
jax: 0.10.0
libtpu: 0.0.40
codegen_flags: <defaults>
</compile_context>

<pallas_src>
import jax
import jax.numpy as jnp
from jax.experimental import pallas as pl
from jax.experimental.pallas import tpu as pltpu

TOKEN2INT = {x: i for i, x in enumerate('().ACGUBEHIMSX')}
VOCAB = len(TOKEN2INT)      # 14
N_TOKEN_CHANNELS = 3        # sequence / structure / loop-type token per position
LANE = 128


def fused_embedding_kernel(src_ref, se_ref, emb_ref, out_ref):
    # src_ref: (TM, 3)                 int32 token ids
    # se_ref : (TM, d_feat_pad)        f32 extra features (zero padded on lanes)
    # emb_ref: (3*VOCAB, 3*n_emb)      f32 block-diagonal embedding table
    # out_ref: (TM, d_out_pad)         f32 fused output (lane-dense, padded)
    src = src_ref[...]                                   # (TM, 3)
    emb = emb_ref[...]                                   # (42, 3*n_emb)
    se = se_ref[...]                                     # (TM, d_feat_pad)
    tm = src_ref.shape[0]
    kdim = emb_ref.shape[0]                              # 3 * VOCAB = 42

    # Single iota (hoisted; no per-channel broadcast_in_dim duplication).
    iota = jax.lax.broadcasted_iota(jnp.int32, (tm, kdim), 1)
    t0 = src[:, 0][:, None]                              # matches cols [0, 14)
    t1 = src[:, 1][:, None] + VOCAB                      # matches cols [14, 28)
    t2 = src[:, 2][:, None] + 2 * VOCAB                  # matches cols [28, 42)
    onehot = ((iota == t0) | (iota == t1) | (iota == t2)).astype(emb.dtype)

    # One fused MXU matmul for all three channel gathers.
    chunk = jnp.dot(onehot, emb, preferred_element_type=jnp.float32)  # (TM, 3*n_emb)

    # Fused concat + single lane-dense store of the whole row.
    out_ref[...] = jnp.concatenate(
        [chunk.astype(out_ref.dtype), se.astype(out_ref.dtype)], axis=-1)


def fused_embedding(src, se, emb_table, *, block_rows=1024):
    """src: (B, L, 3) int, se: (B, L, d_feat) f32, emb_table: (14, n_emb) f32."""
    B, L, C = src.shape
    assert C == N_TOKEN_CHANNELS
    vocab, n_emb = emb_table.shape
    assert vocab == VOCAB
    d_feat = se.shape[-1]
    d_emb = N_TOKEN_CHANNELS * n_emb
    d_out = d_emb + d_feat

    # Lane-dense output: pad feature width up to a multiple of 128 and fold the
    # padding into the `se` slab so the kernel writes full 128-lane rows.
    d_out_pad = pl.cdiv(d_out, LANE) * LANE
    d_feat_pad = d_out_pad - d_emb
    assert d_feat_pad >= d_feat

    N = B * L
    # Real row tile: multiple of 8, no larger than the (padded) row count.
    block_rows = max(8, min(int(block_rows), pl.cdiv(N, 8) * 8))
    block_rows = (block_rows // 8) * 8
    n_blocks = pl.cdiv(N, block_rows)
    N_pad = n_blocks * block_rows

    src_flat = src.reshape(N, C).astype(jnp.int32)
    se_flat = se.reshape(N, d_feat).astype(emb_table.dtype)
    # Row padding (token 0 is a valid index; padded rows are sliced off) and
    # lane padding for `se`.
    src_flat = jnp.pad(src_flat, ((0, N_pad - N), (0, 0)))
    se_flat = jnp.pad(se_flat, ((0, N_pad - N), (0, d_feat_pad - d_feat)))

    # Block-diagonal (42, 3*n_emb) table so all three channels go through one matmul.
    big_table = jnp.zeros((N_TOKEN_CHANNELS * VOCAB, d_emb), emb_table.dtype)
    for k in range(N_TOKEN_CHANNELS):
        big_table = big_table.at[k * VOCAB:(k + 1) * VOCAB,
                                 k * n_emb:(k + 1) * n_emb].set(emb_table)

    # VMEM budget: double-buffered inputs + output tiles + resident table, with
    # headroom; clamped to be safe on v5e (16 MiB scoped) .. v7x (64 MiB phys).
    table_bytes = int(big_table.size) * 4
    io_bytes = 2 * 4 * block_rows * (C + d_feat_pad + d_out_pad)
    vmem_limit_bytes = int(min(64 * 1024 * 1024,
                               max(16 * 1024 * 1024, 2 * (io_bytes + table_bytes))))

    cost = pl.CostEstimate(
        flops=2 * N_pad * (N_TOKEN_CHANNELS * VOCAB) * d_emb,
        transcendentals=0,
        bytes_accessed=4 * N_pad * (C + d_feat_pad + d_out_pad) + table_bytes)

    out_flat = pl.pallas_call(
        fused_embedding_kernel,
        out_shape=jax.ShapeDtypeStruct((N_pad, d_out_pad), emb_table.dtype),
        grid_spec=pltpu.PrefetchScalarGridSpec(
            num_scalar_prefetch=0,
            grid=(n_blocks,),
            in_specs=[
                pl.BlockSpec((block_rows, C), lambda i: (i, 0)),           # tokens
                pl.BlockSpec((block_rows, d_feat_pad), lambda i: (i, 0)),  # se features
                pl.BlockSpec((N_TOKEN_CHANNELS * VOCAB, d_emb),
                             lambda i: (0, 0)),                            # table (resident)
            ],
            out_specs=pl.BlockSpec((block_rows, d_out_pad), lambda i: (i, 0)),
        ),
        compiler_params=pltpu.CompilerParams(
            dimension_semantics=("parallel",),
            vmem_limit_bytes=vmem_limit_bytes),
        cost_estimate=cost,
    )(src_flat, se_flat, big_table)

    return out_flat[:N, :d_out].reshape(B, L, d_out)


def _reference(src, se, emb_table):
    B, L, _ = src.shape
    n_emb = emb_table.shape[1]
    ref_embed = jnp.take(emb_table, src, axis=0).reshape(B, L, N_TOKEN_CHANNELS * n_emb)
    return jnp.concatenate([ref_embed, se], axis=-1)


if __name__ == "__main__":
    key = jax.random.PRNGKey(0)
    k_emb, k_src, k_se, k_src2, k_se2 = jax.random.split(key, 5)

    n_emb = 32
    d_feat = 10                      # 2 * 5 as in the module's d_out property
    emb_table = jax.random.normal(k_emb, (VOCAB, n_emb), jnp.float32) * 0.02

    # Small shape consistent with the module: (B, L, 3) tokens + (B, L, 10) feats.
    B, L = 2, 8
    src = jax.random.randint(k_src, (B, L, N_TOKEN_CHANNELS), 0, VOCAB, jnp.int32)
    se = jax.random.normal(k_se, (B, L, d_feat), jnp.float32)

    out = jax.block_until_ready(fused_embedding(src, se, emb_table))
    ref = _reference(src, se, emb_table)
    assert out.shape == (B, L, N_TOKEN_CHANNELS * n_emb + d_feat), out.shape
    assert jnp.allclose(out, ref, atol=1e-5, rtol=1e-5), "mismatch vs reference"

    # Ragged row count (N not a multiple of the tile) to exercise tail padding.
    B2, L2 = 3, 19
    src2 = jax.random.randint(k_src2, (B2, L2, N_TOKEN_CHANNELS), 0, VOCAB, jnp.int32)
    se2 = jax.random.normal(k_se2, (B2, L2, d_feat), jnp.float32)
    out2 = jax.block_until_ready(fused_embedding(src2, se2, emb_table, block_rows=16))
    ref2 = _reference(src2, se2, emb_table)
    assert out2.shape == (B2, L2, N_TOKEN_CHANNELS * n_emb + d_feat), out2.shape
    assert jnp.allclose(out2, ref2, atol=1e-5, rtol=1e-5), "mismatch vs reference (ragged)"

    print("KERNEL_OK")
</pallas_src>

<mosaic_0001>
module attributes {stable_mosaic.version = 11 : i64} {
  func.func @fused_embedding_kernel(%arg0: i32, %arg1: memref<16x3xi32, #tpu.memory_space<vmem>>, %arg2: memref<16x32xf32, #tpu.memory_space<vmem>>, %arg3: memref<42x96xf32, #tpu.memory_space<vmem>>, %arg4: memref<16x128xf32, #tpu.memory_space<vmem>>) attributes {dimension_semantics = [#tpu.dimension_semantics<parallel>], iteration_bounds = array<i64: 1>, scalar_prefetch = 0 : i64, scratch_operands = 0 : i64, tpu.core_type = #tpu.core_type<tc>, window_params = [{transform_indices = @transform_0, window_bounds = array<i64: 16, 3>}, {transform_indices = @transform_1, window_bounds = array<i64: 16, 32>}, {pipeline_mode = #tpu.pipeline_mode<synchronous>, transform_indices = @transform_2, window_bounds = array<i64: 42, 96>}, {transform_indices = @transform_3, window_bounds = array<i64: 16, 128>}]} {
    %c0 = arith.constant 0 : index
    %c0_0 = arith.constant 0 : index
    %0 = vector.load %arg1[%c0, %c0_0] : memref<16x3xi32, #tpu.memory_space<vmem>>, vector<16x3xi32>
    %c0_1 = arith.constant 0 : index
    %c0_2 = arith.constant 0 : index
    %1 = vector.load %arg3[%c0_1, %c0_2] : memref<42x96xf32, #tpu.memory_space<vmem>>, vector<42x96xf32>
    %c0_3 = arith.constant 0 : index
    %c0_4 = arith.constant 0 : index
    %2 = vector.load %arg2[%c0_3, %c0_4] : memref<16x32xf32, #tpu.memory_space<vmem>>, vector<16x32xf32>
    %3 = tpu.iota {dimensions = array<i32: 1>} : vector<16x42xi32>
    %4 = vector.extract_strided_slice %0 {offsets = [0, 0], sizes = [16, 1], strides = [1, 1]} : vector<16x3xi32> to vector<16x1xi32>
    %5 = vector.shape_cast %4 : vector<16x1xi32> to vector<16xi32>
    %6 = vector.shape_cast %5 : vector<16xi32> to vector<16x1xi32>
    %7 = vector.extract_strided_slice %0 {offsets = [0, 1], sizes = [16, 1], strides = [1, 1]} : vector<16x3xi32> to vector<16x1xi32>
    %8 = vector.shape_cast %7 : vector<16x1xi32> to vector<16xi32>
    %9 = vector.shape_cast %8 : vector<16xi32> to vector<16x1xi32>
    %c14_i32 = arith.constant 14 : i32
    %10 = vector.broadcast %c14_i32 : i32 to vector<16x1xi32>
    %11 = arith.addi %9, %10 : vector<16x1xi32>
    %12 = vector.extract_strided_slice %0 {offsets = [0, 2], sizes = [16, 1], strides = [1, 1]} : vector<16x3xi32> to vector<16x1xi32>
    %13 = vector.shape_cast %12 : vector<16x1xi32> to vector<16xi32>
    %14 = vector.shape_cast %13 : vector<16xi32> to vector<16x1xi32>
    %c28_i32 = arith.constant 28 : i32
    %15 = vector.broadcast %c28_i32 : i32 to vector<16x1xi32>
    %16 = arith.addi %14, %15 : vector<16x1xi32>
    %17 = vector.broadcast %6 : vector<16x1xi32> to vector<16x42xi32>
    %18 = arith.cmpi eq, %3, %17 : vector<16x42xi32>
    %19 = vector.broadcast %11 : vector<16x1xi32> to vector<16x42xi32>
    %20 = arith.cmpi eq, %3, %19 : vector<16x42xi32>
    %21 = arith.ori %18, %20 : vector<16x42xi1>
    %22 = vector.broadcast %16 : vector<16x1xi32> to vector<16x42xi32>
    %23 = arith.cmpi eq, %3, %22 : vector<16x42xi32>
    %24 = arith.ori %21, %23 : vector<16x42xi1>
    %25 = arith.extui %24 : vector<16x42xi1> to vector<16x42xi32>
    %26 = arith.sitofp %25 : vector<16x42xi32> to vector<16x42xf32>
    %cst = arith.constant dense<0.000000e+00> : vector<16x96xf32>
    %27 = tpu.matmul %26, %1, %cst {dimension_numbers = #tpu.dot_dimension_numbers<[1], [0], [0], [1], [0, 0, 1, 1], [], []>} : vector<16x42xf32>, vector<42x96xf32>, vector<16x96xf32> -> vector<16x96xf32>
    %28 = tpu.concatenate %27, %2 in 1 : vector<16x96xf32>, vector<16x32xf32> -> vector<16x128xf32>
    %c0_5 = arith.constant 0 : index
    %c0_6 = arith.constant 0 : index
    %29 = vector.load %arg4[%c0_5, %c0_6] : memref<16x128xf32, #tpu.memory_space<vmem>>, vector<16x128xf32>
    tpu.vector_store %arg4[%c0_5, %c0_6], %28 {strides = array<i32>} : memref<16x128xf32, #tpu.memory_space<vmem>>, vector<16x128xf32>,
    return
  }
  func.func @transform_0(%arg0: i32) -> (i32, i32) {
    %c0_i32 = arith.constant 0 : i32
    %c0_i32_0 = arith.constant 0 : i32
    return %arg0, %c0_i32 : i32, i32
  }
  func.func @transform_1(%arg0: i32) -> (i32, i32) {
    %c0_i32 = arith.constant 0 : i32
    %c0_i32_0 = arith.constant 0 : i32
    return %arg0, %c0_i32 : i32, i32
  }
  func.func @transform_2(%arg0: i32) -> (i32, i32) {
    %c0_i32 = arith.constant 0 : i32
    %c0_i32_0 = arith.constant 0 : i32
    %c0_i32_1 = arith.constant 0 : i32
    return %c0_i32, %c0_i32_0 : i32, i32
  }
  func.func @transform_3(%arg0: i32) -> (i32, i32) {
    %c0_i32 = arith.constant 0 : i32
    %c0_i32_0 = arith.constant 0 : i32
    return %arg0, %c0_i32 : i32, i32
  }
}

</mosaic_0001>

<bundles_post_ra>
// kernel: tpu_custom_call.1
= control target key start
LH: loop header
LB: loop body
LE: loop exit
PB: predicated region body
PF: predicated region fallthrough
CT: control target
= control target key end

     0   :  { %8 = vsyncpa [#allocation3], 0  ;;  %s333_s0 = inlined_call_operand.vmem [shape: s32[16,3], index: 0, kind: input, shape index: {}]   ;;  %s334_s1 = inlined_call_operand.vmem [shape: f32[16,32], index: 1, kind: input, shape index: {}]   ;;  %s335_s2 = inlined_call_operand.hbm [shape: f32[42,96], index: 2, kind: input, shape index: {}]   ;;  %s336_s3 = inlined_call_operand.hbm [shape: f32[16,128], index: 3, kind: output, shape index: {}]  }
   0x1   :  { %9 = vsyncpa [#allocation4], 0  ;;  %s280_s12 = smov [#allocation2]  }
   0x2   :  { %s19_s13 = sshll.u32 %s280_s12, 4  ;;  %s20_s13 = int_to_ptr.vmem [resolvable:$true] %s19_s13 }
   0x3   :  { %s244_s14 = scalar_lea.vmem %s20_s13, 768  ;;  %p249_p1 = scmp.lt.s32.totalorder %s20_s13, %s20_s13 }
   0x4   :  { %p245_p0 = scmp.ne.s32.totalorder %s20_s13, %s244_s14  ;;  %p250_p2 = scmp.lt.s32.totalorder %s244_s14, %s244_s14 }
   0x6   :  { %p251_p3 = por %p250_p2, %p249_p1 }
   0x8   :  { %p252_p4 = pnand %p251_p3, %p245_p0 }
   0xa   :  { %255 = shalt.err (!%p252_p4)
}
   0xb   :  { %s281_s15 = smov 128   ;;  %s282_s16 = smov 8  }
   0xc   :  { %25 = dma.hbm_to_vmem [thread:$0]  %s335_s2, 768, %s20_s13, [#allocation3], %s281_s15, %s281_s15, %s282_s16  }
   0xd   :  { %276 = dma.done.wait [#allocation3], 768  }
   0xe   :  { %277 = vsyncadd [#allocation3], 4294966528  ;;  %v283_v0 = vmov 0   ;;  %vm84_vm0 = vcmask 1041408   ;;  %v30_v1 = vld [vmem:[%s333_s0 + $0x8] sm:$0xff]  ;;  %v29_v2 = vld [vmem:[%s333_s0] sm:$0xff]  ;;  %v39_v19 = vlaneseq }
   0xf   :  { %231 = vset.pattern.permute.xlu1 %v283_v0  ;;  %230 = vset.pattern.permute.xlu0 %v283_v0  ;;  %v36_v3 = vld [vmem:[#allocation2 + $0x28] sm:$0x3]  ;;  %v35_v4 = vld [vmem:[#allocation2 + $0x20] sm:$0xff]  ;;  %v42_v5 = vadd.s32 14, %v30_v1  ;;  %v41_v6 = vadd.s32 14, %v29_v2  ;;  %v284_v7 = vmov 1  }
  0x10   :  { %49 = vperm.xlu1 %231, %v30_v1   ;;  %46 = vperm.xlu0 %230, %v29_v2   ;;  %v34_v8 = vld [vmem:[#allocation2 + $0x18] sm:$0xff]  ;;  %v43_v9 = vadd.s32 28, %v29_v2  ;;  %v44_v10 = vadd.s32 28, %v30_v1  ;;  %v33_v11 = vld [vmem:[#allocation2 + $0x10] sm:$0xff]  ;;  %v285_v12 = vmov 2   ;;  %v32_v13 = vld [vmem:[#allocation2 + $0x8] sm:$0xff] }
  0x11   :  { %206 = vmatprep.subr.msk.mxu0 %vm84_vm0, %v36_v3  ;;  %v37_v14 = vld [vmem:[%s334_s1] sm:$0xff]  ;;  %s286_s23 = smov 96   ;;  %v38_v16 = vld [vmem:[%s334_s1 + $0x8] sm:$0xff]  ;;  %v40_v20 = vand.u32 127, %v39_v19  ;;  %vm77_vm10 = vcmask 343040   ;;  %v287_v25 = vmov 0.0  }
  0x12   :  { %207 = vmatpush3.msk.msra.mxu0 %vm84_vm0, %v36_v3  ;;  %v31_v15 = vld [vmem:[#allocation2] sm:$0xff]  ;;  %vm171_vm12 = vcmask 785408   ;;  %s288_s1 = smov [#allocation5]  }
  0x13   :  { %208 = vmatprep.subr.mxu0 %v35_v4  ;;  %s181_s26 = sshll.u32 %s288_s1, 4  ;;  %s182_s26 = int_to_ptr.vmem [resolvable:$true] %s181_s26 }
  0x14   :  { %233 = vset.pattern.permute.xlu1 %v284_v7  ;;  %232 = vset.pattern.permute.xlu0 %v284_v7  ;;  %s256_s27 = scalar_lea.vmem %s182_s26, 256  ;;  %p261_p6 = scmp.lt.s32.totalorder %s182_s26, %s182_s26 }
  0x15   :  { %57 = vperm.xlu1 %233, %v42_v5   ;;  %54 = vperm.xlu0 %232, %v41_v6   ;;  %p257_p5 = scmp.ne.s32.totalorder %s182_s26, %s256_s27  ;;  %p262_p7 = scmp.lt.s32.totalorder %s256_s27, %s256_s27 }
  0x16   :  { %209 = vmatpush3.msra.mxu0 %v35_v4 }
  0x17   :  { %210 = vmatprep.subr.mxu0 %v34_v8  ;;  %p263_p8 = por %p262_p7, %p261_p6 }
  0x18   :  { %211 = vmatpush3.msra.mxu0 %v34_v8 }
  0x19   :  { %234 = vset.pattern.permute.xlu1 %v285_v12  ;;  %235 = vset.pattern.permute.xlu0 %v285_v12  ;;  %p264_p9 = pnand %p263_p8, %p257_p5 }
  0x1a   :  { %64 = vperm.xlu1 %234, %v43_v9   ;;  %67 = vperm.xlu0 %235, %v44_v10  }
  0x1b   :  { %212 = vmatprep.subr.mxu0 %v33_v11 }
  0x1c   :  { %213 = vmatpush3.msra.mxu0 %v33_v11 }
  0x1d   :  { %214 = vmatprep.subr.mxu0 %v32_v13 }
  0x1e   :  { %215 = vmatpush3.msra.mxu0 %v32_v13  ;;  %165 = vrot.lane.b32.xlu1 %v37_v14, %s286_s23 }
  0x1f   :  { %216 = vmatprep.subr.mxu0 %v31_v15 }
  0x20   :  { %217 = vmatpush3.msra.mxu0 %v31_v15 }
  0x22   :  { %167 = vrot.lane.b32.xlu1 %v38_v16, %s286_s23 }
  0x8b   :  { %v50_v17 = vpop.permute.xlu1 %49  ;;  %v47_v18 = vpop.permute.xlu0 %46 }
  0x8c   :  { %vm52_vm3 = vcmp.eq.s32.totalorder %v40_v20, %v50_v17  ;;  %vm51_vm4 = vcmp.eq.s32.totalorder %v40_v20, %v47_v18 }
  0x90   :  { %v58_v21 = vpop.permute.xlu1 %57  ;;  %v55_v22 = vpop.permute.xlu0 %54 }
  0x91   :  { %vm60_vm1 = vcmp.eq.s32.totalorder %v40_v20, %v58_v21  ;;  %vm59_vm2 = vcmp.eq.s32.totalorder %v40_v20, %v55_v22 }
  0x92   :  { %vm62_vm5 = vmor %vm52_vm3, %vm60_vm1 }
  0x93   :  { %vm61_vm6 = vmor %vm51_vm4, %vm59_vm2 }
  0x95   :  { %v65_v23 = vpop.permute.xlu1 %64  ;;  %v68_v24 = vpop.permute.xlu0 %67 }
  0x96   :  { %vm69_vm7 = vcmp.eq.s32.totalorder %v40_v20, %v65_v23  ;;  %vm70_vm8 = vcmp.eq.s32.totalorder %v40_v20, %v68_v24 }
  0x97   :  { %vm72_vm9 = vmor %vm62_vm5, %vm70_vm8 }
  0x98   :  { %vm71_vm11 = vmor %vm61_vm6, %vm69_vm7  ;;  %v194_v26 = vsel %vm72_vm9, 1.0, %v287_v25 }
  0x99   :  { %v193_v27 = vsel %vm71_vm11, 1.0, %v287_v25  ;;  %v166_v28 = vpop.permute.xlu1 %165 }
  0x9a   :  { %218 = vmatprep.mubr.msk.f32.mxu0 %vm77_vm10, %v193_v27 }
  0x9b   :  { %219 = vmatmul.mubr.msk.f32.vlgmr.msra.gmra.mxu0 %vm77_vm10, %v194_v26 }
  0x9d   :  { %v168_v29 = vpop.permute.xlu1 %167 }
 0x15b   :  { %v220_v30 = vpop.f32.mrf.mxu0 }
 0x15c   :  { %v173_v31 = vsel %vm171_vm12, %v220_v30, %v168_v29 }
 0x15d   :  { %175 = vst [vmem:[#allocation5 + $0x8] sm:$0xff] %v173_v31  ;;  %v154_v32 = vpop.f32.mrf.mxu0 }
 0x15e   :  { %v172_v33 = vsel %vm171_vm12, %v154_v32, %v166_v28 }
 0x15f   :  { %174 = vst [vmem:[#allocation5] sm:$0xff] %v172_v33 }
 0x160   :  { %267 = shalt.err (!%p264_p9)
}
 0x161   :  { %187 = dma.vmem_to_hbm [thread:$0]  %s182_s26, 256, %s336_s3, [#allocation4], %s281_s15, %s281_s15, %s282_s16  }
 0x162   :  { %278 = dma.done.wait [#allocation4], 256  }
 0x163   :  { %279 = vsyncadd [#allocation4], 4294967040 }
 0x164   :  { %191 = vsyncpa [#allocation3], 1 }
 0x165   :  { %192 = vsyncpa [#allocation4], 1 }

</bundles_post_ra>
